<compile_context>
chip_gen: v7x
topology: tpu7x:2x2x1
jax: 0.10.0
libtpu: 0.0.40
codegen_flags: <defaults>
</compile_context>

<pallas_src>
import functools

import jax
import jax.numpy as jnp
from jax.experimental import pallas as pl
from jax.experimental.pallas import tpu as pltpu

LANE = 128
SUBLANE = 8


def _round_up(x, m):
    return ((x + m - 1) // m) * m


def _im2col(x_nhwc, kh, kw, stride, pad):
    """Extract conv patches (plain-JAX glue). Returns [B, Ho*Wo, kh*kw*Cin], Ho, Wo."""
    B, H, W, C = x_nhwc.shape
    xp = jnp.pad(x_nhwc, ((0, 0), (pad, pad), (pad, pad), (0, 0)))
    Ho = (H + 2 * pad - kh) // stride + 1
    Wo = (W + 2 * pad - kw) // stride + 1
    cols = []
    for i in range(kh):
        for j in range(kw):
            cols.append(xp[:, i:i + stride * Ho:stride, j:j + stride * Wo:stride, :])
    patches = jnp.concatenate(cols, axis=-1)                      # [B, Ho, Wo, kh*kw*C]
    return patches.reshape(B, Ho * Wo, kh * kw * C), Ho, Wo


# --------------------------------------------------------------------------------------
# Fused kernel: conv (im2col matmul, bf16 MXU, f32 accumulation) + bias + ReLU
#               + global-average-pool (XLU sum into resident output block).
# Grid = (B, row_tiles), dimension_semantics = ("parallel", "arbitrary").
# --------------------------------------------------------------------------------------
def _conv_pool_body(p_ref, wc_ref, bc_ref, pooled_ref, phi_ref, *, hw_total, n_pad_rows):
    r = pl.program_id(1)

    @pl.when(r == 0)
    def _init():
        pooled_ref[...] = jnp.zeros_like(pooled_ref)

    # Conv as an MXU matmul: bf16 inputs, f32 accumulation; f32 epilogue (bias + ReLU).
    acc = jnp.dot(p_ref[0], wc_ref[...], preferred_element_type=jnp.float32)   # [TR, Cfp]
    phi = jnp.maximum(acc + bc_ref[...], 0.0)

    if phi_ref is not None:                 # test mode only: bf16 writeback of phi
        phi_ref[0] = phi.astype(phi_ref.dtype)

    # Global average pool partial: cross-sublane sum on the XLU (MXU stays on the conv).
    pooled_ref[0] = pooled_ref[0] + jnp.sum(phi, axis=0, keepdims=True)

    @pl.when(r == pl.num_programs(1) - 1)
    def _finalize():
        pooled = pooled_ref[0]
        if n_pad_rows:
            # Zero-padded patch rows contribute exactly relu(bias) each; remove them once.
            pooled = pooled - float(n_pad_rows) * jnp.maximum(bc_ref[...], 0.0)
        pooled_ref[0] = pooled * (1.0 / hw_total)


def _kernel_pool_only(p_ref, wc_ref, bc_ref, pooled_ref, *, hw_total, n_pad_rows):
    _conv_pool_body(p_ref, wc_ref, bc_ref, pooled_ref, None,
                    hw_total=hw_total, n_pad_rows=n_pad_rows)


def _kernel_pool_and_phi(p_ref, wc_ref, bc_ref, pooled_ref, phi_ref, *, hw_total, n_pad_rows):
    _conv_pool_body(p_ref, wc_ref, bc_ref, pooled_ref, phi_ref,
                    hw_total=hw_total, n_pad_rows=n_pad_rows)


# Tiny batched head: logits = pooled @ w_t + b_t, one weight stream for the whole batch.
def _head_kernel(pooled_ref, wt_ref, bt_ref, logit_ref):
    logit_ref[...] = (jnp.dot(pooled_ref[...], wt_ref[...],
                              preferred_element_type=jnp.float32) + bt_ref[...])


def _vmem_config():
    """Per-generation VMEM limit / row cap (v7x only has 64 MiB physical VMEM)."""
    try:
        cap = int(pltpu.get_tpu_info().vmem_capacity_bytes)
    except Exception:
        cap = 64 << 20                                  # conservative fallback
    limit = int(min(cap * 3 // 4, 100 << 20))
    cap_rows = 1024 if cap >= (96 << 20) else 512
    return limit, cap_rows


def _choose_row_tile(hw, p, cf_pad, emit_phi, vmem_budget_bytes, cap_rows):
    """Largest row tile whose *full* resident footprint fits the budget."""
    p_lanes = _round_up(p, LANE)                        # VMEM lane-pads the last dim
    fixed = (_round_up(p, SUBLANE) * cf_pad * 2 * 2     # conv weights (bf16, 2 bufs)
             + cf_pad * 4 * 2                           # conv bias   (f32, 2 bufs)
             + cf_pad * 4 * 2)                          # pooled out block (f32, 2 bufs)
    per_row = p_lanes * 2 * 2                           # patch tile (bf16, 2 bufs)
    per_row += cf_pad * 4                               # f32 phi working tile
    if emit_phi:
        per_row += cf_pad * 2 * 2                       # bf16 phi writeback (2 bufs)
    avail = max(vmem_budget_bytes - fixed, SUBLANE * per_row)
    cap = max(SUBLANE, (avail // per_row) // SUBLANE * SUBLANE)
    return int(min(_round_up(hw, SUBLANE), cap, cap_rows))


class BaselineCUBPallas:
    """Pallas implementation of BaseLine_CUB (arch='ResNet50'-style, flattening_type='adaptive')."""

    def __init__(self, key, in_ch=3, feat_ch=32, n_concepts=16, kh=3, kw=3, stride=2, pad=1,
                 test=False):
        self.kh, self.kw, self.stride, self.pad = kh, kw, stride, pad
        self.feat_ch, self.n_concepts = feat_ch, n_concepts
        self.test = test

        P = kh * kw * in_ch
        self.P = P                                       # natural patch dim (no lane pad)
        self.Cf_pad = _round_up(feat_ch, LANE)
        self.K_pad = _round_up(n_concepts, LANE)

        k1, k2, k3, k4 = jax.random.split(key, 4)
        # backbone stand-in conv params (deterministic init)
        self.w_conv = (jax.random.normal(k1, (P, feat_ch), jnp.float32)
                       * (1.0 / jnp.sqrt(P)))
        self.b_conv = jax.random.normal(k2, (1, feat_ch), jnp.float32) * 0.01
        # Logistic_Regression_t params: Linear(ip_size=feat_ch, op_size=n_concepts)
        self.w_t = (jax.random.normal(k3, (feat_ch, n_concepts), jnp.float32)
                    * (1.0 / jnp.sqrt(feat_ch)))
        self.b_t = jax.random.normal(k4, (1, n_concepts), jnp.float32) * 0.01

        # Kernel-side parameters: feature/concept dims lane-dense (128-multiple); the
        # patch dim P is left at its natural size (BlockSpec last dim == full array dim).
        self.wc_pad = jnp.pad(self.w_conv, ((0, 0), (0, self.Cf_pad - feat_ch))
                              ).astype(jnp.bfloat16)
        self.bc_pad = jnp.pad(self.b_conv, ((0, 0), (0, self.Cf_pad - feat_ch)))
        self.wt_pad = jnp.pad(self.w_t, ((0, self.Cf_pad - feat_ch),
                                         (0, self.K_pad - n_concepts)))
        self.bt_pad = jnp.pad(self.b_t, ((0, 0), (0, self.K_pad - n_concepts)))

        self.vmem_limit, self.cap_rows = _vmem_config()

    def __call__(self, x_nchw, test=None):
        test = self.test if test is None else test
        B = x_nchw.shape[0]
        x_nhwc = jnp.transpose(x_nchw, (0, 2, 3, 1)).astype(jnp.float32)
        patches, Ho, Wo = _im2col(x_nhwc, self.kh, self.kw, self.stride, self.pad)
        HW = Ho * Wo

        TR = _choose_row_tile(HW, self.P, self.Cf_pad, test,
                              self.vmem_limit // 2, self.cap_rows)
        HW_pad = _round_up(HW, TR)
        n_r = HW_pad // TR

        # bf16 patch stream at natural P; only the row dim is padded (to a TR multiple).
        patches_bf16 = jnp.pad(patches.astype(jnp.bfloat16),
                               ((0, 0), (0, HW_pad - HW), (0, 0)))

        kern = functools.partial(_kernel_pool_and_phi if test else _kernel_pool_only,
                                 hw_total=HW, n_pad_rows=HW_pad - HW)

        pooled_shape = jax.ShapeDtypeStruct((B, 1, self.Cf_pad), jnp.float32)
        pooled_spec = pl.BlockSpec((1, 1, self.Cf_pad), lambda b, r: (b, 0, 0))
        if test:
            out_shape = (pooled_shape,
                         jax.ShapeDtypeStruct((B, HW_pad, self.Cf_pad), jnp.bfloat16))
            out_specs = [pooled_spec,
                         pl.BlockSpec((1, TR, self.Cf_pad), lambda b, r: (b, r, 0))]
        else:
            out_shape = (pooled_shape,)
            out_specs = [pooled_spec]

        grid_spec = pltpu.PrefetchScalarGridSpec(
            num_scalar_prefetch=0,
            grid=(B, n_r),
            in_specs=[
                pl.BlockSpec((1, TR, self.P), lambda b, r: (b, r, 0)),      # patches
                pl.BlockSpec((self.P, self.Cf_pad), lambda b, r: (0, 0)),   # w_conv (bf16)
                pl.BlockSpec((1, self.Cf_pad), lambda b, r: (0, 0)),        # b_conv (f32)
            ],
            out_specs=out_specs,
        )

        outs = pl.pallas_call(
            kern,
            out_shape=out_shape,
            grid_spec=grid_spec,
            compiler_params=pltpu.CompilerParams(
                dimension_semantics=("parallel", "arbitrary"),
                vmem_limit_bytes=self.vmem_limit),
        )(patches_bf16, self.wc_pad, self.bc_pad)

        pooled = outs[0][:, 0, :]                                           # (B, Cf_pad)

        # Batched Logistic_Regression_t head: single MXU matmul for the whole batch.
        logits_pad = pl.pallas_call(
            _head_kernel,
            out_shape=jax.ShapeDtypeStruct((B, self.K_pad), jnp.float32),
        )(pooled, self.wt_pad, self.bt_pad)
        logits = logits_pad[:, :self.n_concepts]

        if test:
            # PyTorch returns phi as an NCHW feature map in test mode.
            phi = (outs[1][:, :HW, :self.feat_ch].astype(jnp.float32)
                   .reshape(B, Ho, Wo, self.feat_ch))
            return logits, jnp.transpose(phi, (0, 3, 1, 2))
        return logits


def _reference(model, x_nchw):
    """Pure-JAX reference (mirrors the kernel's bf16 conv inputs / f32 accumulation)."""
    x_nhwc = jnp.transpose(x_nchw, (0, 2, 3, 1)).astype(jnp.float32)
    patches, Ho, Wo = _im2col(x_nhwc, model.kh, model.kw, model.stride, model.pad)
    p = patches.astype(jnp.bfloat16).astype(jnp.float32)
    w = model.w_conv.astype(jnp.bfloat16).astype(jnp.float32)
    phi = jnp.maximum(
        jax.lax.dot_general(p, w, (((2,), (0,)), ((), ())),
                            precision=jax.lax.Precision.HIGHEST) + model.b_conv, 0.0)
    pooled = phi.mean(axis=1)
    logits = jnp.dot(pooled, model.w_t, precision=jax.lax.Precision.HIGHEST) + model.b_t
    phi_nchw = jnp.transpose(phi.reshape(-1, Ho, Wo, model.feat_ch), (0, 3, 1, 2))
    return logits, phi_nchw


if __name__ == "__main__":
    key = jax.random.PRNGKey(0)
    k_param, k_x = jax.random.split(key)

    # small shapes: batch=2, channels=3, spatial=16x16 image (NCHW, PyTorch convention)
    x = jax.random.normal(k_x, (2, 3, 16, 16), jnp.float32)

    model = BaselineCUBPallas(k_param, in_ch=3, feat_ch=32, n_concepts=16)

    # training-mode forward: logits only
    logits = model(x)
    logits = jax.block_until_ready(logits)

    ref_logits, ref_phi = _reference(model, x)
    assert logits.shape == (2, 16)
    assert jnp.allclose(logits, ref_logits, atol=3e-3, rtol=3e-3), "logits mismatch"

    # test-mode forward: (logits, phi) like the PyTorch module with test=True
    logits_t, phi = model(x, test=True)
    logits_t = jax.block_until_ready(logits_t)
    phi = jax.block_until_ready(phi)
    assert phi.shape == ref_phi.shape
    assert jnp.allclose(logits_t, ref_logits, atol=3e-3, rtol=3e-3), "test logits mismatch"
    assert jnp.allclose(phi, ref_phi, atol=2e-2, rtol=2e-2), "phi mismatch"

    print("KERNEL_OK")
</pallas_src>

<mosaic_0001>
module attributes {stable_mosaic.version = 11 : i64} {
  func.func @_kernel_pool_only(%arg0: i32, %arg1: i32, %arg2: memref<1x64x27xbf16, #tpu.memory_space<vmem>>, %arg3: memref<27x128xbf16, #tpu.memory_space<vmem>>, %arg4: memref<1x128xf32, #tpu.memory_space<vmem>>, %arg5: memref<1x1x128xf32, #tpu.memory_space<vmem>>) attributes {dimension_semantics = [#tpu.dimension_semantics<parallel>, #tpu.dimension_semantics<arbitrary>], iteration_bounds = array<i64: 2, 1>, scalar_prefetch = 0 : i64, scratch_operands = 0 : i64, tpu.core_type = #tpu.core_type<tc>, window_params = [{transform_indices = @transform_0, window_bounds = array<i64: 1, 64, 27>}, {pipeline_mode = #tpu.pipeline_mode<synchronous>, transform_indices = @transform_1, window_bounds = array<i64: 27, 128>}, {pipeline_mode = #tpu.pipeline_mode<synchronous>, transform_indices = @transform_2, window_bounds = array<i64: 1, 128>}, {transform_indices = @transform_3, window_bounds = array<i64: 1, 1, 128>}]} {
    %c0_i32 = arith.constant 0 : i32
    %0 = arith.cmpi eq, %arg1, %c0_i32 : i32
    %1 = arith.extui %0 : i1 to i32
    %c0_i32_0 = arith.constant 0 : i32
    %2 = arith.cmpi ne, %1, %c0_i32_0 : i32
    scf.if %2 {
      %cst_17 = arith.constant 0.000000e+00 : f32
      %23 = vector.broadcast %cst_17 : f32 to vector<1x1x128xf32>
      %c0_18 = arith.constant 0 : index
      %c0_19 = arith.constant 0 : index
      %c0_20 = arith.constant 0 : index
      %24 = vector.load %arg5[%c0_18, %c0_19, %c0_20] : memref<1x1x128xf32, #tpu.memory_space<vmem>>, vector<1x1x128xf32>
      tpu.vector_store %arg5[%c0_18, %c0_19, %c0_20], %23 {strides = array<i32>} : memref<1x1x128xf32, #tpu.memory_space<vmem>>, vector<1x1x128xf32>,
    } else {
    }
    %c0 = arith.constant 0 : index
    %c0_1 = arith.constant 0 : index
    %c0_2 = arith.constant 0 : index
    %3 = vector.load %arg2[%c0, %c0_1, %c0_2] : memref<1x64x27xbf16, #tpu.memory_space<vmem>>, vector<1x64x27xbf16>
    %4 = vector.shape_cast %3 : vector<1x64x27xbf16> to vector<64x27xbf16>
    %c0_3 = arith.constant 0 : index
    %c0_4 = arith.constant 0 : index
    %5 = vector.load %arg3[%c0_3, %c0_4] : memref<27x128xbf16, #tpu.memory_space<vmem>>, vector<27x128xbf16>
    %cst = arith.constant dense<0.000000e+00> : vector<64x128xf32>
    %6 = tpu.matmul %4, %5, %cst {dimension_numbers = #tpu.dot_dimension_numbers<[1], [0], [0], [1], [0, 0, 1, 1], [], []>} : vector<64x27xbf16>, vector<27x128xbf16>, vector<64x128xf32> -> vector<64x128xf32>
    %c0_5 = arith.constant 0 : index
    %c0_6 = arith.constant 0 : index
    %7 = vector.load %arg4[%c0_5, %c0_6] : memref<1x128xf32, #tpu.memory_space<vmem>>, vector<1x128xf32>
    %8 = vector.broadcast %7 : vector<1x128xf32> to vector<64x128xf32>
    %9 = arith.addf %6, %8 : vector<64x128xf32>
    %cst_7 = arith.constant 0.000000e+00 : f32
    %10 = vector.broadcast %cst_7 : f32 to vector<64x128xf32>
    %11 = arith.maximumf %9, %10 : vector<64x128xf32>
    %c0_8 = arith.constant 0 : index
    %c0_9 = arith.constant 0 : index
    %c0_10 = arith.constant 0 : index
    %12 = vector.load %arg5[%c0_8, %c0_9, %c0_10] : memref<1x1x128xf32, #tpu.memory_space<vmem>>, vector<1x1x128xf32>
    %13 = vector.shape_cast %12 : vector<1x1x128xf32> to vector<1x128xf32>
    %cst_11 = arith.constant dense<0.000000e+00> : vector<128xf32>
    %14 = vector.multi_reduction <add>, %11, %cst_11 [0] : vector<64x128xf32> to vector<128xf32>
    %15 = vector.shape_cast %14 : vector<128xf32> to vector<1x128xf32>
    %16 = arith.addf %13, %15 : vector<1x128xf32>
    %c0_12 = arith.constant 0 : index
    %c0_13 = arith.constant 0 : index
    %c0_14 = arith.constant 0 : index
    %17 = vector.load %arg5[%c0_12, %c0_13, %c0_14] : memref<1x1x128xf32, #tpu.memory_space<vmem>>, vector<1x1x128xf32>
    %18 = vector.shape_cast %17 : vector<1x1x128xf32> to vector<1x128xf32>
    %19 = vector.shape_cast %16 : vector<1x128xf32> to vector<1x1x128xf32>
    tpu.vector_store %arg5[%c0_12, %c0_13, %c0_14], %19 {strides = array<i32>} : memref<1x1x128xf32, #tpu.memory_space<vmem>>, vector<1x1x128xf32>,
    %c0_i32_15 = arith.constant 0 : i32
    %20 = arith.cmpi eq, %arg1, %c0_i32_15 : i32
    %21 = arith.extui %20 : i1 to i32
    %c0_i32_16 = arith.constant 0 : i32
    %22 = arith.cmpi ne, %21, %c0_i32_16 : i32
    scf.if %22 {
      %c0_17 = arith.constant 0 : index
      %c0_18 = arith.constant 0 : index
      %c0_19 = arith.constant 0 : index
      %23 = vector.load %arg5[%c0_17, %c0_18, %c0_19] : memref<1x1x128xf32, #tpu.memory_space<vmem>>, vector<1x1x128xf32>
      %24 = vector.shape_cast %23 : vector<1x1x128xf32> to vector<1x128xf32>
      %cst_20 = arith.constant 1.562500e-02 : f32
      %25 = vector.broadcast %cst_20 : f32 to vector<1x128xf32>
      %26 = arith.mulf %24, %25 : vector<1x128xf32>
      %c0_21 = arith.constant 0 : index
      %c0_22 = arith.constant 0 : index
      %c0_23 = arith.constant 0 : index
      %27 = vector.load %arg5[%c0_21, %c0_22, %c0_23] : memref<1x1x128xf32, #tpu.memory_space<vmem>>, vector<1x1x128xf32>
      %28 = vector.shape_cast %27 : vector<1x1x128xf32> to vector<1x128xf32>
      %29 = vector.shape_cast %26 : vector<1x128xf32> to vector<1x1x128xf32>
      tpu.vector_store %arg5[%c0_21, %c0_22, %c0_23], %29 {strides = array<i32>} : memref<1x1x128xf32, #tpu.memory_space<vmem>>, vector<1x1x128xf32>,
    } else {
    }
    return
  }
  func.func @transform_0(%arg0: i32, %arg1: i32) -> (i32, i32, i32) {
    %c0_i32 = arith.constant 0 : i32
    %c0_i32_0 = arith.constant 0 : i32
    return %arg0, %arg1, %c0_i32 : i32, i32, i32
  }
  func.func @transform_1(%arg0: i32, %arg1: i32) -> (i32, i32) {
    %c0_i32 = arith.constant 0 : i32
    %c0_i32_0 = arith.constant 0 : i32
    %c0_i32_1 = arith.constant 0 : i32
    return %c0_i32, %c0_i32_0 : i32, i32
  }
  func.func @transform_2(%arg0: i32, %arg1: i32) -> (i32, i32) {
    %c0_i32 = arith.constant 0 : i32
    %c0_i32_0 = arith.constant 0 : i32
    %c0_i32_1 = arith.constant 0 : i32
    return %c0_i32, %c0_i32_0 : i32, i32
  }
  func.func @transform_3(%arg0: i32, %arg1: i32) -> (i32, i32, i32) {
    %c0_i32 = arith.constant 0 : i32
    %c0_i32_0 = arith.constant 0 : i32
    %c0_i32_1 = arith.constant 0 : i32
    return %arg0, %c0_i32, %c0_i32_0 : i32, i32, i32
  }
}

</mosaic_0001>

<bundles_post_ra>
// kernel: tpu_custom_call.1
= control target key start
LH: loop header
LB: loop body
LE: loop exit
PB: predicated region body
PF: predicated region fallthrough
CT: control target
= control target key end

     0   :  { %8 = vsyncpa [#allocation3], 0  ;;  %s792_s0 = inlined_call_operand.vmem [shape: bf16[2,64,27], index: 0, kind: input, shape index: {}]   ;;  %s793_s1 = inlined_call_operand.vmem [shape: bf16[27,128], index: 1, kind: input, shape index: {}]   ;;  %s794_s2 = inlined_call_operand.vmem [shape: f32[1,128], index: 2, kind: input, shape index: {}]   ;;  %s795_s3 = inlined_call_operand.hbm [shape: f32[2,1,128], index: 3, kind: output, shape index: {}]  }
   0x1   :  { %10 = vsyncpa [#allocation3 + $0x1], 0  ;;  %s659_s12 = smov 0   ;;  %s661_s13 = smov 0  }
   0x2   :  { %s663_s14 = smov 0   ;;  %s665_s15 = smov 0  }
   0x3   :  { %s667_s16 = smov 0   ;;  %s669_s17 = smov 0  }
   0x4 LB: > { %s449_s18 = sadd.s32 4294967295, %s634_s17   ;;  %s450_s19 = sadd.s32 4294967294, %s634_s17   ;;  %s634_s17 = sphi %s669_s17, %s16_s17   ;;  %s630_s16 = sphi %s667_s16, %s802_s16   ;;  %s626_s15 = sphi %s665_s15, %s801_s15   ;;  %s622_s14 = sphi %s663_s14, %s800_s14   ;;  %s618_s13 = sphi %s661_s13, %s799_s13   ;;  %s614_s12 = sphi %s659_s12, %s798_s12  }
   0x5   : > { %s28_s20 = sadd.s32 1, %s630_s16  ;;  %s105_s21 = sadd.s32 1, %s622_s14 }
   0x6   : > { %p30_p0 = scmp.ge.s32.totalorder %s28_s20, 2  ;;  %p115_p1 = scmp.ne.s32.totalorder %s622_s14, %s618_s13 }
   0x7   : > { %p116_p2 = scmp.eq.s32.totalorder %s449_s18, 1  ;;  %p121_p3 = scmp.ne.s32.totalorder %s618_s13, %s614_s12 }
   0x8   : > { %s804_s20 = smov (%p30_p0, %s28_s20), 0  ;;  %p122_p5 = scmp.eq.s32.totalorder %s450_s19, 1 }
   0x9   : > { %p699_p4 = por %p116_p2, %p115_p1  ;;  %s102_s23 = ssub.s32 %s630_s16, %s804_s20 }
   0xa   : > { %p453_p6 = scmp.ge.s32.totalorder %s634_s17, 1  ;;  %p103_p7 = scmp.eq.s32.totalorder %s102_s23, 0 }
   0xb   : > { %p706_p8 = por %p122_p5, %p121_p3  ;;  %p159_p9 = scmp.lt.s32.totalorder %s634_s17, 3 }
   0xc   : > { %s712_s25 = scalar_select %p103_p7, %s622_s14, %s105_s21  }
   0xd   : > { %p160_p10 = pnand %p453_p6, %p159_p9 }
   0xe   : > { %v550_v0 = vld [vmem:[%s793_s1] sm:$0xff] (!%p160_p10)   ;;  %vm265_vm0 = vcmask (!%p160_p10), 1044480   ;;  %v551_v1 = vld [vmem:[%s793_s1 + $0x8] sm:$0x3f] (!%p160_p10)   ;;  %vm266_vm1 = vcmask (!%p160_p10), 1045504   ;;  %p187_p11 = scmp.lt.s32.totalorder (!%p160_p10), %s626_s15, 1 }
   0xf   : > { %163 = sbr.rel (%p160_p10) target bundleno = 299 (0x12b), region = 32  ;;  %477 = vmatprep.subr.bf16.mxu0 (!%p160_p10), %v550_v0  ;;  %489 = vmatprep.subr.bf16.mxu1 (!%p160_p10), %v550_v0  ;;  %v636_v2 = vmov (!%p160_p10), 65535   ;;  %vm252_vm2 = vcmask (!%p160_p10), 220160   ;;  %s184_s8 = sand.u32 (!%p160_p10), 1, %s618_s13   ;;  %v637_v10 = vmov (!%p160_p10), 0.0  }
  0x10   : > { %478 = vmatpush3.bf16.msra.mxu0 (!%p160_p10), %v550_v0  ;;  %v267_v3 = vsel (!%p160_p10), %vm265_vm0, 4294967295, %v636_v2  ;;  %491 = vmatpush3.bf16.msra.mxu1 (!%p160_p10), %v550_v0  ;;  %s728_s9 = scalar_lea.vmem (!%p160_p10), [#allocation2], %s184_s8  ;;  %v456_v11 = vld [vmem:[%s794_s2] ss:$0 sm:$0xff] (!%p160_p10)  ;;  %s467_s18 = sshll.u32 (!%p160_p10), %s626_s15, 4 }
  0x11   : > { %v268_v4 = vsel (!%p160_p10), %vm266_vm1, %v267_v3, 0  ;;  %201 = vst [vmem:[%s728_s9] sm:$0x1] (!%p160_p10), %v637_v10  ;;  %s380_s19 = sshll.u32 (!%p160_p10), %s728_s9, 4  ;;  %s742_s26 = scalar_lea.hbm (!%p160_p10), %s795_s3, %s467_s18  ;;  %s744_s19 = int_to_ptr.vmem [resolvable:$true] %s380_s19 }
  0x12   : > { %v270_v5 = vand.u32 (!%p160_p10), %v551_v1, %v268_v4  ;;  %s368_s27 = scalar_lea.sflag (!%p160_p10), [#allocation3], %s184_s8  ;;  %s556_s28 = scalar_lea.vmem (!%p160_p10), %s744_s19, 16 }
  0x13   : > { %p557_p12 = scmp.ne.s32.totalorder (!%p160_p10), %s744_s19, %s556_s28 }
  0x14   : > { %479 = vmatprep.subr.bf16.mxu0 (!%p160_p10), %v270_v5  ;;  %490 = vmatprep.subr.bf16.mxu1 (!%p160_p10), %v270_v5 }
  0x15   : > { %480 = vmatpush3.bf16.msra.mxu0 (!%p160_p10), %v270_v5  ;;  %492 = vmatpush3.bf16.msra.mxu1 (!%p160_p10), %v270_v5  ;;  %p558_p13 = pnand (!%p160_p10), %p557_p12, %p699_p4 }
  0x16   : > { %s188_s30 = scalar_select %p187_p11, %s626_s15, 1 }
  0x17   : > { %p559_p0 = pneg %p558_p13  ;;  %s638_s15 = smov [#allocation2]  }
  0x18   : > { %s470_s4 = sshll.u32 %s188_s30, 5  ;;  %v345_v48 = vld [vmem:[%s728_s9] sm:$0x1]  ;;  %s560_s29 = sshll.u32 %s638_s15, 4  ;;  %s561_s29 = int_to_ptr.vmem [resolvable:$false] %s560_s29 }
  0x19   : > { %s194_s7 = scalar_lea.vmem %s792_s0, %s470_s4  ;;  %s562_s30 = scalar_lea.vmem %s561_s29, 32 }
  0x1a   : > { %v552_v6 = vld [vmem:[%s194_s7] sm:$0xff]   ;;  %v553_v7 = vld [vmem:[%s194_s7 + $0x8] sm:$0xff]   ;;  %v554_v8 = vld [vmem:[%s194_s7 + $0x10] sm:$0xff]   ;;  %p563_p1 = scmp.lt.s32.totalorder %s744_s19, %s561_s29  ;;  %p564_p2 = scmp.lt.s32.totalorder %s562_s30, %s556_s28 }
  0x1b   : > { %481 = vmatprep.mubr.msk.bf16.mxu0 %vm252_vm2, %v552_v6  ;;  %v555_v9 = vld [vmem:[%s194_s7 + $0x18] sm:$0xff]   ;;  %485 = vmatprep.mubr.msk.bf16.mxu1 %vm252_vm2, %v554_v8 }
  0x1c   : > { %482 = vmatmul.mubr.msk.bf16.vlgmr.msra.gmra.mrb[0].mxu0 %vm252_vm2, %v553_v7  ;;  %486 = vmatmul.mubr.msk.bf16.vlgmr.msra.gmra.mrb[0].mxu1 %vm252_vm2, %v555_v9  ;;  %p565_p3 = por %p564_p2, %p563_p1 }
  0x1e   : > { %p566_p5 = pnand %p565_p3, %p559_p0 }
  0xef   : > { %v483_v12 = vpop.f32.mrb[0].mxu0  ;;  %v487_v16 = vpop.f32.mrb[0].mxu1 }
  0xf0   : > { %v306_v13 = vpop.f32.mrb[1].mxu0  ;;  %v322_v18 = vpop.f32.mrb[1].mxu1  ;;  %v315_v19 = vadd.f32 %v483_v12, %v456_v11  ;;  %v331_v33 = vadd.f32 %v487_v16, %v456_v11 }
  0xf1   : > { %v307_v14 = vadd.f32 %v456_v11, %v306_v13  ;;  %v484_v15 = vpop.f32.mrb[2].mxu0  ;;  %v488_v21 = vpop.f32.mrb[2].mxu1  ;;  %v323_v26 = vadd.f32 %v456_v11, %v322_v18 }
  0xf2   : > { %v309_v17 = vpop.f32.mrb[3].mxu0  ;;  %v325_v22 = vpop.f32.mrb[3].mxu1  ;;  %v318_v24 = vadd.f32 %v484_v15, %v456_v11  ;;  %v339_v27 = vmax.f32 %v315_v19, 0.0  ;;  %v334_v36 = vadd.f32 %v488_v21, %v456_v11  ;;  %v343_v38 = vmax.f32 %v331_v33, 0.0 }
  0xf3   : > { %v310_v20 = vadd.f32 %v456_v11, %v309_v17  ;;  %v337_v23 = vmax.f32 %v307_v14, 0.0  ;;  %v341_v31 = vmax.f32 %v323_v26, 0.0  ;;  %v326_v32 = vadd.f32 %v456_v11, %v325_v22 }
  0xf4   : > { %v340_v29 = vmax.f32 %v318_v24, 0.0  ;;  %v344_v40 = vmax.f32 %v334_v36, 0.0 }
  0xf5   : > { %v338_v25 = vmax.f32 %v310_v20, 0.0  ;;  %v342_v37 = vmax.f32 %v326_v32, 0.0 }
  0xf7   : > { %v346_v28 = vadd.f32 %v338_v25, %v337_v23 }
  0xf9   : > { %v347_v30 = vadd.f32 %v346_v28, %v339_v27 }
  0xfb   : > { %v348_v34 = vadd.f32 %v347_v30, %v340_v29 }
  0xfd   : > { %v349_v35 = vadd.f32 %v348_v34, %v341_v31 }
  0xff   : > { %v350_v39 = vadd.f32 %v349_v35, %v342_v37 }
 0x101   : > { %v351_v41 = vadd.f32 %v350_v39, %v343_v38 }
 0x103   : > { %v352_v42 = vadd.f32 %v351_v41, %v344_v40 }
 0x105   : > { %v353_v43 = vrot.slane %v352_v42, 4 }
 0x107   : > { %v354_v44 = vadd.f32 %v353_v43, %v352_v42 }
 0x109   : > { %v355_v45 = vrot.slane %v354_v44, 2 }
 0x10b   : > { %v356_v46 = vadd.f32 %v355_v45, %v354_v44 }
 0x10d   : > { %v357_v47 = vrot.slane %v356_v46, 1 }
 0x10f   : > { %v358_v49 = vadd.f32 %v357_v47, %v356_v46 }
 0x111   : > { %v359_v50 = vadd.f32 %v358_v49, %v345_v48 }
 0x113   : > { %360 = vst [vmem:[%s728_s9] sm:$0x1] %v359_v50 }
 0x11a   : > { %v364_v51 = vld [vmem:[%s728_s9] sm:$0x1] }
 0x11b   : > { %v365_v52 = vmul.f32 0.015625, %v364_v51 }
 0x11d   : > { %366 = vst [vmem:[%s728_s9] sm:$0x1] %v365_v52 }
 0x11e   : > { %569 = shalt.err (!%p566_p5)
}
 0x11f   : > { %s570_s4 = scalar_lea.hbm %s742_s26, 16  ;;  %s574_s7 = scalar_lea.hbm %s795_s3, 32 }
 0x120   : > { %p571_p6 = scmp.ne.s32.totalorder %s742_s26, %s570_s4  ;;  %p575_p10 = scmp.lt.u32.totalorder %s742_s26, %s795_s3 }
 0x121   : > { %p576_p11 = scmp.lt.u32.totalorder %s574_s7, %s570_s4  ;;  %p578_p13 = scmp.lt.u32.totalorder %s570_s4, %s742_s26 }
 0x122   : > { %p572_p7 = pnand %p571_p6, %p699_p4 }
 0x123   : > { %p577_p12 = por %p576_p11, %p575_p10 }
 0x124   : > { %p573_p9 = pneg %p572_p7 }
 0x125   : > { %p579_p0 = por %p578_p13, %p577_p12 }
 0x127   : > { %p580_p1 = pnand %p579_p0, %p573_p9 }
 0x129   : > { %583 = shalt.err (!%p580_p1)
}
 0x12a   : > { %493 = dma.vmem_to_hbm [thread:$0]  (%p699_p4), %s744_s19, 16, %s742_s26, %s368_s27  }
 0x12b PF: > { %p499_p2 = scmp.ge.s32.totalorder %s634_s17, 2  ;;  %s392_s10 = sand.u32 1, %s614_s12  }
 0x12c   : > { %s393_s11 = scalar_lea.sflag [#allocation3], %s392_s10 }
 0x12d   : > { %p496_p3 = pnand %p499_p2, %p706_p8 }
 0x12f   : > { %609 = dma.done.wait (!%p496_p3), %s393_s11, 16  }
 0x130   : > { %611 = vsyncadd (!%p496_p3), %s393_s11, 4294967280  ;;  %s16_s17 = sadd.s32 1, %s634_s17   ;;  %s798_s12 = smov %s618_s13 }
 0x131   : > { %p13_p5 = scmp.ge.s32.totalorder %s16_s17, 4   ;;  %s799_s13 = smov %s622_s14 }
 0x132   : > { %s800_s14 = smov %s712_s25  ;;  %s801_s15 = smov %s630_s16 }
 0x133   : > { %s802_s16 = smov %s804_s20  ;;  %15 = sbr.rel (!%p13_p5) target bundleno = 4 (0x4), region = 75 }
 0x13a   :  { %397 = vsyncpa [#allocation3], 1 }
 0x13b   :  { %399 = vsyncpa [#allocation3 + $0x1], 1 }

</bundles_post_ra>
